<compile_context>
chip_gen: v7x
topology: tpu7x:2x2x1
jax: 0.10.0
libtpu: 0.0.40
codegen_flags: <defaults>
</compile_context>

<pallas_src>
import jax
import jax.numpy as jnp
from jax.experimental import pallas as pl
from jax.experimental.pallas import tpu as pltpu


def _round_up(x, m):
    return ((x + m - 1) // m) * m


def linear_kernel(x_ref, wt_ref, b_ref, o_ref):
    # x_ref: (TM, K), wt_ref: (K, N) pre-transposed, b_ref: (1, N), o_ref: (TM, N)
    acc = jnp.dot(x_ref[...], wt_ref[...], preferred_element_type=jnp.float32)
    o_ref[...] = (acc + b_ref[...]).astype(o_ref.dtype)


def medicare_linear(x, weight, bias, *, min_pallas_batch=2048, tm_cap=16384):
    """Forward pass of MedicareRegressionModel.

    x:      (batch, input_dim)       float32
    weight: (output_dim, input_dim)  float32   (PyTorch nn.Linear layout)
    bias:   (output_dim,)            float32
    returns (batch, output_dim)      float32
    """
    batch, input_dim = x.shape
    output_dim = weight.shape[0]

    # One-time, wrapper-side transpose of the ~2 KiB weight to (K, N).
    w_t = jnp.transpose(weight)            # (input_dim, output_dim)
    b2d = bias.reshape(1, output_dim)      # broadcastable row vector

    # Small-problem regime: kernel launch + DMA round trip dominate; plain XLA
    # fusion matches or beats the Pallas path, so don't regress it.
    if batch < min_pallas_batch:
        return x @ w_t + b2d

    # Large, VMEM-safe row tiles; always >= 2 grid steps so the v7x megacore
    # can shard the "parallel" batch axis across both TensorCores.
    tm = min(tm_cap, _round_up(-(-batch // 2), 8))
    grid = (pl.cdiv(batch, tm),)

    flops = 2 * batch * input_dim * output_dim
    bytes_accessed = 4 * (
        batch * input_dim + input_dim * output_dim + output_dim + batch * output_dim
    )

    return pl.pallas_call(
        linear_kernel,
        out_shape=jax.ShapeDtypeStruct((batch, output_dim), x.dtype),
        grid=grid,
        in_specs=[
            # x streams in row-tiles over the batch grid axis (double-buffered).
            pl.BlockSpec((tm, input_dim), lambda i: (i, 0)),
            # weight / bias stay resident in VMEM across all grid steps.
            pl.BlockSpec((input_dim, output_dim), lambda i: (0, 0)),
            pl.BlockSpec((1, output_dim), lambda i: (0, 0)),
        ],
        out_specs=pl.BlockSpec((tm, output_dim), lambda i: (i, 0)),
        compiler_params=pltpu.CompilerParams(
            dimension_semantics=("parallel",),
        ),
        cost_estimate=pl.CostEstimate(
            flops=flops, transcendentals=0, bytes_accessed=bytes_accessed
        ),
    )(x, w_t, b2d)


if __name__ == "__main__":
    key = jax.random.PRNGKey(0)
    kx, kw, kb = jax.random.split(key, 3)

    batch, input_dim, output_dim = 8, 32, 16

    x = jax.random.normal(kx, (batch, input_dim), dtype=jnp.float32)
    # Deterministic parameter init (mimicking nn.Linear's uniform fan-in init).
    bound = 1.0 / (input_dim ** 0.5)
    weight = jax.random.uniform(
        kw, (output_dim, input_dim), minval=-bound, maxval=bound, dtype=jnp.float32
    )
    bias = jax.random.uniform(
        kb, (output_dim,), minval=-bound, maxval=bound, dtype=jnp.float32
    )

    # 1) Small shape, Pallas path forced (min_pallas_batch=0) so the kernel
    #    itself is exercised even below the production fallback threshold.
    out = medicare_linear(x, weight, bias, min_pallas_batch=0)
    out = jax.block_until_ready(out)
    ref = x @ weight.T + bias
    assert out.shape == (batch, output_dim)
    assert jnp.allclose(out, ref, atol=1e-5, rtol=1e-5)

    # 2) Mid-size, non-tile-aligned batch: >= threshold -> Pallas path with a
    #    2-step grid and a partial last tile.
    mid_batch = 2500
    xm = jax.random.normal(kx, (mid_batch, input_dim), dtype=jnp.float32)
    out_m = jax.block_until_ready(medicare_linear(xm, weight, bias))
    ref_m = xm @ weight.T + bias
    assert out_m.shape == (mid_batch, output_dim)
    assert jnp.allclose(out_m, ref_m, atol=1e-4, rtol=1e-4)

    # 3) Large batch: exercises the 16384-row tile cap (3 grid steps, partial
    #    last tile).
    big_batch = 40000
    xb = jax.random.normal(kx, (big_batch, input_dim), dtype=jnp.float32)
    out_b = jax.block_until_ready(medicare_linear(xb, weight, bias))
    ref_b = xb @ weight.T + bias
    assert out_b.shape == (big_batch, output_dim)
    assert jnp.allclose(out_b, ref_b, atol=1e-4, rtol=1e-4)

    # 4) Small batch with default threshold -> XLA fallback path.
    out_s = jax.block_until_ready(medicare_linear(x, weight, bias))
    assert jnp.allclose(out_s, ref, atol=1e-5, rtol=1e-5)

    print("KERNEL_OK")
</pallas_src>

<mosaic_0001>
module attributes {stable_mosaic.version = 11 : i64} {
  func.func @linear_kernel(%arg0: i32, %arg1: memref<8x32xf32, #tpu.memory_space<vmem>>, %arg2: memref<32x16xf32, #tpu.memory_space<vmem>>, %arg3: memref<1x16xf32, #tpu.memory_space<vmem>>, %arg4: memref<8x16xf32, #tpu.memory_space<vmem>>) attributes {dimension_semantics = [#tpu.dimension_semantics<parallel>], iteration_bounds = array<i64: 1>, scalar_prefetch = 0 : i64, scratch_operands = 0 : i64, tpu.core_type = #tpu.core_type<tc>, window_params = [{transform_indices = @transform_0, window_bounds = array<i64: 8, 32>}, {pipeline_mode = #tpu.pipeline_mode<synchronous>, transform_indices = @transform_1, window_bounds = array<i64: 32, 16>}, {pipeline_mode = #tpu.pipeline_mode<synchronous>, transform_indices = @transform_2, window_bounds = array<i64: 1, 16>}, {transform_indices = @transform_3, window_bounds = array<i64: 8, 16>}]} {
    %c0 = arith.constant 0 : index
    %c0_0 = arith.constant 0 : index
    %0 = vector.load %arg1[%c0, %c0_0] : memref<8x32xf32, #tpu.memory_space<vmem>>, vector<8x32xf32>
    %c0_1 = arith.constant 0 : index
    %c0_2 = arith.constant 0 : index
    %1 = vector.load %arg2[%c0_1, %c0_2] : memref<32x16xf32, #tpu.memory_space<vmem>>, vector<32x16xf32>
    %cst = arith.constant dense<0.000000e+00> : vector<8x16xf32>
    %2 = tpu.matmul %0, %1, %cst {dimension_numbers = #tpu.dot_dimension_numbers<[1], [0], [0], [1], [0, 0, 1, 1], [], []>} : vector<8x32xf32>, vector<32x16xf32>, vector<8x16xf32> -> vector<8x16xf32>
    %c0_3 = arith.constant 0 : index
    %c0_4 = arith.constant 0 : index
    %3 = vector.load %arg3[%c0_3, %c0_4] : memref<1x16xf32, #tpu.memory_space<vmem>>, vector<1x16xf32>
    %4 = vector.broadcast %3 : vector<1x16xf32> to vector<8x16xf32>
    %5 = arith.addf %2, %4 : vector<8x16xf32>
    %c0_5 = arith.constant 0 : index
    %c0_6 = arith.constant 0 : index
    %6 = vector.load %arg4[%c0_5, %c0_6] : memref<8x16xf32, #tpu.memory_space<vmem>>, vector<8x16xf32>
    tpu.vector_store %arg4[%c0_5, %c0_6], %5 {strides = array<i32>} : memref<8x16xf32, #tpu.memory_space<vmem>>, vector<8x16xf32>,
    return
  }
  func.func @transform_0(%arg0: i32) -> (i32, i32) {
    %c0_i32 = arith.constant 0 : i32
    %c0_i32_0 = arith.constant 0 : i32
    return %arg0, %c0_i32 : i32, i32
  }
  func.func @transform_1(%arg0: i32) -> (i32, i32) {
    %c0_i32 = arith.constant 0 : i32
    %c0_i32_0 = arith.constant 0 : i32
    %c0_i32_1 = arith.constant 0 : i32
    return %c0_i32, %c0_i32_0 : i32, i32
  }
  func.func @transform_2(%arg0: i32) -> (i32, i32) {
    %c0_i32 = arith.constant 0 : i32
    %c0_i32_0 = arith.constant 0 : i32
    %c0_i32_1 = arith.constant 0 : i32
    return %c0_i32, %c0_i32_0 : i32, i32
  }
  func.func @transform_3(%arg0: i32) -> (i32, i32) {
    %c0_i32 = arith.constant 0 : i32
    %c0_i32_0 = arith.constant 0 : i32
    return %arg0, %c0_i32 : i32, i32
  }
}

</mosaic_0001>

<bundles_post_ra>
// kernel: tpu_custom_call.1
= control target key start
LH: loop header
LB: loop body
LE: loop exit
PB: predicated region body
PF: predicated region fallthrough
CT: control target
= control target key end

     0   :  { %v169_v3 = vmov 0.0|0.0   ;;  %vm170_vm0 = vmmov 0   ;;  %v171_v6 = vmov 0.0   ;;  %s223_s0 = inlined_call_operand.vmem [shape: f32[8,32], index: 0, kind: input, shape index: {}]   ;;  %s224_s1 = inlined_call_operand.vmem [shape: f32[32,16], index: 1, kind: input, shape index: {}]   ;;  %s225_s2 = inlined_call_operand.vmem [shape: f32[1,16], index: 2, kind: input, shape index: {}]   ;;  %s226_s3 = inlined_call_operand.hbm [shape: f32[8,16], index: 3, kind: output, shape index: {}]  }
   0x1   :  { %v16_v0 = vld [vmem:[%s224_s1] sm:$0xff]  ;;  %v17_v1 = vld [vmem:[%s224_s1 + $0x8] sm:$0xff]  ;;  %v18_v2 = vld [vmem:[%s224_s1 + $0x10] sm:$0xff]  ;;  %135 = vmatprep.subr.bf16.mxu0 %v169_v3  ;;  %132 = vmatprep.mubr.msk.f32.mxu0 %vm170_vm0, %v171_v6 }
   0x2   :  { %v136_v4 = vpack.c.bf16 %v17_v1, %v16_v0  ;;  %v19_v5 = vld [vmem:[%s224_s1 + $0x18] sm:$0xff] }
   0x3   :  { %8 = vsyncpa [#allocation3], 0  ;;  %v139_v7 = vpack.c.bf16 %v19_v5, %v18_v2  ;;  %v15_v8 = vld [vmem:[%s223_s0] sm:$0xff]  ;;  %vm27_vm1 = vcmask 261120   ;;  %s172_s24 = smov [#allocation2]   ;;  %vm101_vm2 = vcmask 130048  }
   0x4   :  { %137 = vmatpush3.bf16.msra.mxu0 %v136_v4  ;;  %v117_v9 = vld [vmem:[%s225_s2] ss:$0 sm:$0xff]  ;;  %s109_s1 = sshll.u32 %s172_s24, 4  ;;  %s110_s1 = int_to_ptr.vmem [resolvable:$true] %s109_s1 }
   0x5   :  { %138 = vmatprep.subr.bf16.mxu0 %v169_v3  ;;  %s145_s25 = scalar_lea.vmem %s110_s1, 128  ;;  %p150_p1 = scmp.lt.s32.totalorder %s110_s1, %s110_s1 }
   0x6   :  { %p146_p0 = scmp.ne.s32.totalorder %s110_s1, %s145_s25  ;;  %p151_p2 = scmp.lt.s32.totalorder %s145_s25, %s145_s25 }
   0x8   :  { %140 = vmatpush3.bf16.msra.mxu0 %v139_v7  ;;  %p152_p3 = por %p151_p2, %p150_p1 }
   0xa   :  { %p153_p4 = pnand %p152_p3, %p146_p0 }
   0xb   :  { %133 = vmatmul.mubr.msk.f32.vlgmr.msra.gmra.mrb[0].mxu0 %vm27_vm1, %v15_v8 }
  0xde   :  { %v97_v10 = vpop.f32.mrb[0].mxu0 }
  0xdf   :  { %v98_v11 = vadd.f32 %v117_v9, %v97_v10  ;;  %v134_v12 = vpop.f32.mrb[1].mxu0 }
  0xe1   :  { %102 = vst.msk [vmem:[#allocation2] sm:$0xff] %vm101_vm2, %v98_v11 }
  0xe2   :  { %156 = shalt.err (!%p153_p4)
}
  0xe3   :  { %s157_s27 = scalar_lea.hbm %s226_s3, 128 }
  0xe4   :  { %p158_p5 = scmp.ne.s32.totalorder %s226_s3, %s157_s27  ;;  %p161_p6 = scmp.lt.u32.totalorder %s157_s27, %s226_s3 }
  0xe6   :  { %p163_p7 = pnand %p161_p6, %p158_p5 }
  0xe8   :  { %166 = shalt.err (!%p163_p7)
}
  0xe9   :  { %112 = dma.vmem_to_hbm [thread:$0]  %s110_s1, 128, %s226_s3, [#allocation3]  }
  0xea   :  { %167 = dma.done.wait [#allocation3], 128  }
  0xeb   :  { %168 = vsyncadd [#allocation3], 4294967168 }
  0xec   :  { %116 = vsyncpa [#allocation3], 1 }

</bundles_post_ra>
